<compile_context>
chip_gen: v5e
topology: v5e:2x2
jax: 0.10.0
libtpu: 0.0.40
codegen_flags: <defaults>
</compile_context>

<pallas_src>
import functools
import math

import jax
import jax.numpy as jnp
from jax.experimental import pallas as pl
from jax.experimental.pallas import tpu as pltpu


def _arcface_kernel(emb_ref, w_ref, scale_ref, label_ref, tgt_ref, out_ref, *,
                    tn, clip_lo_s, clip_hi_s):
    """One (tb, tn) tile of the ArcFace logits.

    emb_ref   : (tb, D)  mxu dtype  L2-normalized embeddings (resident over j)
    w_ref     : (D, tn)  mxu dtype  streamed raw weight tile
    scale_ref : (1, tn)  f32        s / ||w_col||   (precomputed in wrapper)
    label_ref : (tb, 1)  int32
    tgt_ref   : (tb, 1)  f32        s * final_target_logit (precomputed, f32)
    out_ref   : (tb, tn) f32
    """
    j = pl.program_id(1)

    # MXU matmul with f32 accumulation; the folded (1/||w|| * s) column scale
    # is a single (tb, tn) VPU multiply.
    cos_s = jnp.dot(emb_ref[...], w_ref[...],
                    preferred_element_type=jnp.float32) * scale_ref[...]
    cos_s = jnp.clip(cos_s, clip_lo_s, clip_hi_s)          # s-scaled clamp

    # One-hot of label inside this class tile (tile-local compare: (tb,1)
    # subtract + constant iota, no (tb,tn) offset add).
    lbl_loc = label_ref[...] - j * tn                       # (tb, 1)
    col = jax.lax.broadcasted_iota(jnp.int32, cos_s.shape, 1)
    onehot = col == lbl_loc                                 # (tb, tn) bool

    # Scatter the pre-scaled, f32-computed margin logit into the label column;
    # all other columns keep s * cos_theta.  Lane-dense store.
    out_ref[...] = jnp.where(onehot, tgt_ref[...], cos_s)


def arcface_forward(embeddings, weight, label, *, s=64.0, m=0.5,
                    easy_margin=False, tn=None, tb=None,
                    mxu_dtype=jnp.bfloat16, trim_output=True):
    """embeddings: (B, D); weight: (D, N); label: (B,) int -> (B, N) f32."""
    B, D = embeddings.shape
    D2, N = weight.shape
    assert D == D2
    cos_m, sin_m = math.cos(m), math.sin(m)
    th, mm = math.cos(math.pi - m), math.sin(math.pi - m) * m

    # ---- hoisted, once-per-call f32 prep (all O(B*D) or O(D*N) elementwise) --
    emb = embeddings.astype(jnp.float32)
    # Row L2-norm (matches PyTorch l2_norm; zero rows NaN exactly like PyTorch).
    emb_n = emb * jax.lax.rsqrt(jnp.sum(emb * emb, axis=1, keepdims=True))

    w32 = weight.astype(jnp.float32)
    # Per-column inverse weight norm, f32, eps-guarded (padded columns stay 0).
    inv_w = jax.lax.rsqrt(
        jnp.maximum(jnp.sum(w32 * w32, axis=0, keepdims=True), 1e-12))  # (1, N)
    scale = (inv_w * s).astype(jnp.float32)                              # (1, N)

    # Target-logit / margin math in full f32 (exact PyTorch branch behaviour).
    lbl = label.astype(jnp.int32)
    w_lbl = w32[:, lbl]                                                  # (D, B)
    t = (jnp.sum(emb_n * w_lbl.T, axis=1, keepdims=True)
         * inv_w[0, lbl][:, None])                                       # (B, 1)
    t = jnp.clip(t, -1.0 + 1e-5, 1.0 + 1e-5)
    sin_t = jnp.sqrt(jnp.maximum(1.0 - t * t, 0.0))   # guard sqrt(neg) -> NaN
    cos_t_m = t * cos_m - sin_t * sin_m
    if easy_margin:
        final_t = jnp.where(t > 0.0, cos_t_m, t)
    else:
        final_t = jnp.where(t > th, cos_t_m, t - mm)
    tgt_s = (final_t * s).astype(jnp.float32)                            # (B, 1)

    # ---- tiling -------------------------------------------------------------
    n128 = ((N + 127) // 128) * 128
    if tn is None:
        tn = min(2048, n128)          # bf16 weight tile @ D=512 -> 2 MiB
    tn = min(tn, n128)
    assert tn % 128 == 0
    n_pad = ((N + tn - 1) // tn) * tn

    if tb is None:
        if B >= 512 and B % 256 == 0:
            tb = 256
        elif B >= 512 and B % 128 == 0:
            tb = 128
        else:
            tb = B
    assert B % tb == 0

    # ---- stream operands (MXU dtype), f32 scales ----------------------------
    w_mxu = w32.astype(mxu_dtype)
    emb_mxu = emb_n.astype(mxu_dtype)
    if n_pad != N:
        w_mxu = jnp.pad(w_mxu, ((0, 0), (0, n_pad - N)))
        scale = jnp.pad(scale, ((0, 0), (0, n_pad - N)))
    label2d = lbl.reshape(B, 1)

    itemsize = jnp.dtype(mxu_dtype).itemsize
    cost = pl.CostEstimate(
        flops=2 * B * D * n_pad,
        transcendentals=0,
        bytes_accessed=int(D * n_pad * itemsize + B * D * itemsize
                           + n_pad * 4 + 2 * B * 4 + B * n_pad * 4))

    kernel = functools.partial(
        _arcface_kernel, tn=tn,
        clip_lo_s=(-1.0 + 1e-5) * s, clip_hi_s=(1.0 + 1e-5) * s)

    out = pl.pallas_call(
        kernel,
        out_shape=jax.ShapeDtypeStruct((B, n_pad), jnp.float32),
        grid_spec=pltpu.PrefetchScalarGridSpec(
            num_scalar_prefetch=0,
            grid=(B // tb, n_pad // tn),
            in_specs=[
                pl.BlockSpec((tb, D), lambda i, j: (i, 0)),   # embeddings
                pl.BlockSpec((D, tn), lambda i, j: (0, j)),   # weight (streamed)
                pl.BlockSpec((1, tn), lambda i, j: (0, j)),   # s / ||w_col||
                pl.BlockSpec((tb, 1), lambda i, j: (i, 0)),   # labels
                pl.BlockSpec((tb, 1), lambda i, j: (i, 0)),   # s * target logit
            ],
            out_specs=pl.BlockSpec((tb, tn), lambda i, j: (i, j)),
        ),
        compiler_params=pltpu.CompilerParams(
            dimension_semantics=("parallel", "parallel")),
        cost_estimate=cost,
    )(emb_mxu, w_mxu, scale, label2d, tgt_s)

    if trim_output and n_pad != N:
        out = out[:, :N]
    return out


def arcface_reference(embeddings, weight, label, *, s=64.0, m=0.5,
                      easy_margin=False, mxu_dtype=jnp.float32):
    """Pure-JAX reference.  With mxu_dtype=f32 it mirrors the PyTorch forward
    (with the sqrt argument clamped at 0); with bf16 it emulates the kernel's
    bf16-operand / f32-accumulate / f32-column-scale path."""
    cos_m, sin_m = math.cos(m), math.sin(m)
    th, mm = math.cos(math.pi - m), math.sin(math.pi - m) * m
    emb = embeddings.astype(jnp.float32)
    emb_n = emb / jnp.linalg.norm(emb, axis=1, keepdims=True)
    w32 = weight.astype(jnp.float32)
    inv_w = 1.0 / jnp.maximum(jnp.linalg.norm(w32, axis=0, keepdims=True), 1e-6)
    prec = "highest" if mxu_dtype == jnp.float32 else None
    cos = jnp.dot(emb_n.astype(mxu_dtype), w32.astype(mxu_dtype),
                  preferred_element_type=jnp.float32, precision=prec) * inv_w
    cos = jnp.clip(cos, -1.0 + 1e-5, 1.0 + 1e-5)
    # Target column computed in full f32 (same as the hoisted wrapper math).
    t = (jnp.sum(emb_n * w32[:, label].T, axis=1, keepdims=True)
         * inv_w[0, label][:, None])
    t = jnp.clip(t, -1.0 + 1e-5, 1.0 + 1e-5)
    sin_t = jnp.sqrt(jnp.maximum(1.0 - t * t, 0.0))
    cos_t_m = t * cos_m - sin_t * sin_m
    if easy_margin:
        final_t = jnp.where(t > 0.0, cos_t_m, t)
    else:
        final_t = jnp.where(t > th, cos_t_m, t - mm)
    onehot = jax.nn.one_hot(label, weight.shape[1], dtype=bool)
    return jnp.where(onehot, final_t, cos) * s


if __name__ == "__main__":
    key = jax.random.PRNGKey(0)

    # Case 1: tiny shapes, single class tile, f32 MXU path (tight tolerance).
    B, D, N = 8, 32, 128
    k_emb, k_w, k_lbl, key = jax.random.split(key, 4)
    embeddings = jax.random.normal(k_emb, (B, D), dtype=jnp.float32)
    weight = 0.01 * jax.random.normal(k_w, (D, N), dtype=jnp.float32)
    label = jax.random.randint(k_lbl, (B,), 0, N, dtype=jnp.int32)

    out = jax.block_until_ready(
        arcface_forward(embeddings, weight, label, mxu_dtype=jnp.float32))
    ref = arcface_reference(embeddings, weight, label)
    assert out.shape == (B, N)
    assert jnp.allclose(out, ref, atol=2e-3, rtol=2e-3), "case 1 mismatch"

    # Case 2: N not a multiple of 128, multiple class tiles + padded columns.
    B2, D2, N2 = 8, 64, 300
    k_emb2, k_w2, k_lbl2, key = jax.random.split(key, 4)
    embeddings2 = jax.random.normal(k_emb2, (B2, D2), dtype=jnp.float32)
    weight2 = 0.01 * jax.random.normal(k_w2, (D2, N2), dtype=jnp.float32)
    label2 = jax.random.randint(k_lbl2, (B2,), 0, N2, dtype=jnp.int32)

    out2 = jax.block_until_ready(
        arcface_forward(embeddings2, weight2, label2, tn=128,
                        mxu_dtype=jnp.float32))
    ref2 = arcface_reference(embeddings2, weight2, label2)
    assert out2.shape == (B2, N2)
    assert jnp.allclose(out2, ref2, atol=2e-3, rtol=2e-3), "case 2 mismatch"

    # Case 3: default bf16 streaming path, 2-D grid (batch tiles x class tiles),
    # checked against the bf16-emulated reference (f32 target path in both).
    B3, D3, N3 = 32, 64, 384
    k_emb3, k_w3, k_lbl3, key = jax.random.split(key, 4)
    embeddings3 = jax.random.normal(k_emb3, (B3, D3), dtype=jnp.float32)
    weight3 = 0.01 * jax.random.normal(k_w3, (D3, N3), dtype=jnp.float32)
    label3 = jax.random.randint(k_lbl3, (B3,), 0, N3, dtype=jnp.int32)

    out3 = jax.block_until_ready(
        arcface_forward(embeddings3, weight3, label3, tn=128, tb=16))
    ref3 = arcface_reference(embeddings3, weight3, label3,
                             mxu_dtype=jnp.bfloat16)
    assert out3.shape == (B3, N3)
    assert jnp.allclose(out3, ref3, atol=5e-3, rtol=2e-3), "case 3 mismatch"

    print("KERNEL_OK")
</pallas_src>

<mosaic_0001>
module attributes {stable_mosaic.version = 11 : i64} {
  func.func @_arcface_kernel(%arg0: i32, %arg1: i32, %arg2: memref<8x32xf32, #tpu.memory_space<vmem>>, %arg3: memref<32x128xf32, #tpu.memory_space<vmem>>, %arg4: memref<1x128xf32, #tpu.memory_space<vmem>>, %arg5: memref<8x1xi32, #tpu.memory_space<vmem>>, %arg6: memref<8x1xf32, #tpu.memory_space<vmem>>, %arg7: memref<8x128xf32, #tpu.memory_space<vmem>>) attributes {dimension_semantics = [#tpu.dimension_semantics<parallel>, #tpu.dimension_semantics<parallel>], iteration_bounds = array<i64: 1, 1>, scalar_prefetch = 0 : i64, scratch_operands = 0 : i64, tpu.core_type = #tpu.core_type<tc>, window_params = [{transform_indices = @transform_0, window_bounds = array<i64: 8, 32>}, {transform_indices = @transform_1, window_bounds = array<i64: 32, 128>}, {transform_indices = @transform_2, window_bounds = array<i64: 1, 128>}, {transform_indices = @transform_3, window_bounds = array<i64: 8, 1>}, {transform_indices = @transform_4, window_bounds = array<i64: 8, 1>}, {transform_indices = @transform_5, window_bounds = array<i64: 8, 128>}]} {
    %c0 = arith.constant 0 : index
    %c0_0 = arith.constant 0 : index
    %0 = vector.load %arg2[%c0, %c0_0] : memref<8x32xf32, #tpu.memory_space<vmem>>, vector<8x32xf32>
    %c0_1 = arith.constant 0 : index
    %c0_2 = arith.constant 0 : index
    %1 = vector.load %arg3[%c0_1, %c0_2] : memref<32x128xf32, #tpu.memory_space<vmem>>, vector<32x128xf32>
    %cst = arith.constant dense<0.000000e+00> : vector<8x128xf32>
    %2 = tpu.matmul %0, %1, %cst {dimension_numbers = #tpu.dot_dimension_numbers<[1], [0], [0], [1], [0, 0, 1, 1], [], []>} : vector<8x32xf32>, vector<32x128xf32>, vector<8x128xf32> -> vector<8x128xf32>
    %c0_3 = arith.constant 0 : index
    %c0_4 = arith.constant 0 : index
    %3 = vector.load %arg4[%c0_3, %c0_4] : memref<1x128xf32, #tpu.memory_space<vmem>>, vector<1x128xf32>
    %4 = vector.broadcast %3 : vector<1x128xf32> to vector<8x128xf32>
    %5 = arith.mulf %2, %4 : vector<8x128xf32>
    %cst_5 = arith.constant -63.9993591 : f32
    %cst_6 = arith.constant 64.0006409 : f32
    %6 = vector.broadcast %cst_5 : f32 to vector<8x128xf32>
    %7 = arith.maximumf %6, %5 : vector<8x128xf32>
    %8 = vector.broadcast %cst_6 : f32 to vector<8x128xf32>
    %9 = arith.minimumf %8, %7 : vector<8x128xf32>
    %c0_7 = arith.constant 0 : index
    %c0_8 = arith.constant 0 : index
    %10 = vector.load %arg5[%c0_7, %c0_8] : memref<8x1xi32, #tpu.memory_space<vmem>>, vector<8x1xi32>
    %c128_i32 = arith.constant 128 : i32
    %11 = arith.muli %arg1, %c128_i32 : i32
    %12 = vector.broadcast %11 : i32 to vector<8x1xi32>
    %13 = arith.subi %10, %12 : vector<8x1xi32>
    %14 = tpu.iota {dimensions = array<i32: 1>} : vector<8x128xi32>
    %15 = vector.broadcast %13 : vector<8x1xi32> to vector<8x128xi32>
    %16 = arith.cmpi eq, %14, %15 : vector<8x128xi32>
    %c0_9 = arith.constant 0 : index
    %c0_10 = arith.constant 0 : index
    %17 = vector.load %arg6[%c0_9, %c0_10] : memref<8x1xf32, #tpu.memory_space<vmem>>, vector<8x1xf32>
    %18 = vector.shape_cast %17 : vector<8x1xf32> to vector<8x1xf32>
    %19 = vector.broadcast %18 : vector<8x1xf32> to vector<8x128xf32>
    %20 = arith.select %16, %19, %9 : vector<8x128xi1>, vector<8x128xf32>
    %c0_11 = arith.constant 0 : index
    %c0_12 = arith.constant 0 : index
    %21 = vector.load %arg7[%c0_11, %c0_12] : memref<8x128xf32, #tpu.memory_space<vmem>>, vector<8x128xf32>
    tpu.vector_store %arg7[%c0_11, %c0_12], %20 {strides = array<i32>} : memref<8x128xf32, #tpu.memory_space<vmem>>, vector<8x128xf32>,
    return
  }
  func.func @transform_0(%arg0: i32, %arg1: i32) -> (i32, i32) {
    %c0_i32 = arith.constant 0 : i32
    %c0_i32_0 = arith.constant 0 : i32
    return %arg0, %c0_i32 : i32, i32
  }
  func.func @transform_1(%arg0: i32, %arg1: i32) -> (i32, i32) {
    %c0_i32 = arith.constant 0 : i32
    %c0_i32_0 = arith.constant 0 : i32
    return %c0_i32, %arg1 : i32, i32
  }
  func.func @transform_2(%arg0: i32, %arg1: i32) -> (i32, i32) {
    %c0_i32 = arith.constant 0 : i32
    %c0_i32_0 = arith.constant 0 : i32
    return %c0_i32, %arg1 : i32, i32
  }
  func.func @transform_3(%arg0: i32, %arg1: i32) -> (i32, i32) {
    %c0_i32 = arith.constant 0 : i32
    %c0_i32_0 = arith.constant 0 : i32
    return %arg0, %c0_i32 : i32, i32
  }
  func.func @transform_4(%arg0: i32, %arg1: i32) -> (i32, i32) {
    %c0_i32 = arith.constant 0 : i32
    %c0_i32_0 = arith.constant 0 : i32
    return %arg0, %c0_i32 : i32, i32
  }
  func.func @transform_5(%arg0: i32, %arg1: i32) -> (i32, i32) {
    %c0_i32 = arith.constant 0 : i32
    return %arg0, %arg1 : i32, i32
  }
}

</mosaic_0001>

<bundles_post_ra>
// kernel: tpu_custom_call.1
= control target key start
LH: loop header
LB: loop body
LE: loop exit
PB: predicated region body
PF: predicated region fallthrough
CT: control target
= control target key end

     0   :  { %10 = vsyncpa [#allocation3], 0  ;;  %s221_s0 = inlined_call_operand.vmem [shape: f32[8,32], index: 0, kind: input, shape index: {}]   ;;  %s222_s1 = inlined_call_operand.hbm [shape: f32[32,128], index: 1, kind: input, shape index: {}]   ;;  %s223_s2 = inlined_call_operand.vmem [shape: f32[1,128], index: 2, kind: input, shape index: {}]   ;;  %s224_s3 = inlined_call_operand.vmem [shape: s32[8,1], index: 3, kind: input, shape index: {}]   ;;  %s225_s4 = inlined_call_operand.vmem [shape: f32[8,1], index: 4, kind: input, shape index: {}]   ;;  %s226_s5 = inlined_call_operand.hbm [shape: f32[8,128], index: 5, kind: output, shape index: {}]  }
   0x1   :  { %11 = vsyncpa [#allocation4], 0  ;;  %s18_s20 = sshll.u32 %s222_s1, 4  ;;  %s168_s21 = smov [#allocation2]   ;;  %s19_s20 = int_to_ptr.hbm [resolvable:$true] %s18_s20 }
   0x2   :  { %s20_s22 = sshll.u32 %s168_s21, 4  ;;  %s169_s23 = smov 128   ;;  %s21_s22 = int_to_ptr.vmem [resolvable:$true] %s20_s22 }
   0x3   :  { %s170_s24 = smov 8  }
   0x4   :  { %26 = dma.hbm_to_vmem [thread:$0]  %s19_s20, 512, %s21_s22, [#allocation3], %s169_s23, %s169_s23, %s170_s24  }
   0x5   :  { %164 = dma.done.wait [#allocation3], 512  }
   0x6   :  { %165 = vsyncadd [#allocation3], 4294966784  ;;  %v171_v0 = vmov 0   ;;  %v41_v1 = vld [vmem:[#allocation2 + $0x18] sm:$0xff]  ;;  %v40_v2 = vld [vmem:[#allocation2 + $0x10] sm:$0xff]  ;;  %vm42_vm0 = vcmask 261120   ;;  %v77_v10 = vlaneseq }
   0x7   :  { %114 = vset.pattern.permute.xlu0 %v171_v0  ;;  %58 = vmatpush.msra.mxu0 %v41_v1  ;;  %v73_v3 = vld [vmem:[%s224_s3] sm:$0xff]  ;;  %v39_v4 = vld [vmem:[#allocation2 + $0x8] sm:$0xff]  ;;  %s172_s6 = smov [#allocation5]   ;;  %s98_s9 = sshll.u32 %s226_s5, 4  ;;  %s99_s9 = int_to_ptr.hbm [resolvable:$true] %s98_s9 }
   0x8   :  { %80 = vperm.xlu0 %114, %v73_v3   ;;  %v38_v5 = vld [vmem:[#allocation2] sm:$0xff]  ;;  %v78_v13 = vand.u32 127, %v77_v10 }
   0x9   :  { %59 = vmatpush.msra.mxu0 %v40_v2  ;;  %v37_v6 = vld [vmem:[%s221_s0] sm:$0xff]  ;;  %s96_s0 = sshll.u32 %s172_s6, 4  ;;  %s97_s0 = int_to_ptr.vmem [resolvable:$true] %s96_s0 }
   0xa   :  { %v83_v7 = vld [vmem:[%s225_s4] sm:$0xff] }
   0xb   :  { %60 = vmatpush.msra.mxu0 %v39_v4  ;;  %v115_v9 = vld [vmem:[%s223_s2] ss:$0 sm:$0xff] }
   0xd   :  { %61 = vmatpush.msra.mxu0 %v38_v5 }
   0xe   :  { %108 = vmatmul.msk.f32.vlgmr.msra.gmra.mxu0 %vm42_vm0, %v37_v6 }
  0x10   :  { %86 = vperm.xlu0 %114, %v83_v7  }
  0x7a   :  { %v81_v8 = vpop.permute.xlu0 %80 }
  0x7b   :  { %vm82_vm1 = vcmp.eq.s32.totalorder %v78_v13, %v81_v8 }
  0x82   :  { %v87_v16 = vpop.permute.xlu0 %86 }
  0x8b   :  { %v63_v11 = vpop.f32.mrf.mxu0 }
  0x8c   :  { %v70_v12 = vmul.f32 %v115_v9, %v63_v11 }
  0x8e   :  { %v71_v14 = vmax.f32 %v70_v12, -63.99936 }
  0x90   :  { %v72_v15 = vmin.f32 %v71_v14, 64.00064 }
  0x92   :  { %v89_v17 = vsel %vm82_vm1, %v87_v16, %v72_v15 }
  0x93   :  { %90 = vst [vmem:[#allocation5] sm:$0xff] %v89_v17 }
  0x94   :  { %101 = dma.vmem_to_hbm [thread:$0]  %s97_s0, 128, %s99_s9, [#allocation4]  }
  0x95   :  { %166 = dma.done.wait [#allocation4], 128  }
  0x96   :  { %167 = vsyncadd [#allocation4], 4294967168 }
  0x97   :  { %106 = vsyncpa [#allocation3], 1 }
  0x98   :  { %107 = vsyncpa [#allocation4], 1 }

</bundles_post_ra>
